<compile_context>
chip_gen: v5e
topology: v5e:2x2
jax: 0.10.0
libtpu: 0.0.40
codegen_flags: <defaults>
</compile_context>

<pallas_src>
import functools

import jax
import jax.numpy as jnp
import numpy as np
from jax import lax
from jax.experimental import pallas as pl
from jax.experimental.pallas import tpu as pltpu

_NEG_INF = -1e30


def _dotgat_kernel(h_ref, bias_ref, perm_ref,
                   w1_ref, w2_ref, wch_ref, wcp_ref, bc_ref,
                   out_ref, *, block_b, num_nodes):
    bt, n = block_b, num_nodes
    rows = bt * n
    # Additive block-diagonal mask: 0 on edges (within a graph), -1e30 on
    # non-edges and cross-graph pairs.  Precomputed once in the wrapper.
    bias = bias_ref[...]                                          # (rows, rows) f32

    def dotgat_layer(x_flat, w_ref):
        hid = w_ref.shape[1]
        scale = 1.0 / (float(hid) ** 0.5)
        # One full-width MXU projection for the whole graph block.
        ft = jnp.dot(x_flat, w_ref[...],
                     preferred_element_type=jnp.float32)          # (rows, H) f32
        ft_bf = ft.astype(jnp.bfloat16)                           # single bf16 copy
        # Block-diagonal score S = ft @ ft^T over the flattened rows.
        s = lax.dot_general(ft_bf, ft_bf, (((1,), (1,)), ((), ())),
                            preferred_element_type=jnp.float32)   # (rows, rows) f32
        masked = s + bias
        m = jnp.max(masked, axis=-1, keepdims=True)               # finite (self-loops)
        # 1/sqrt(H) folded into the exp argument; the -1e30 sentinel underflows
        # exp to exactly 0, so no second select is needed.
        e = jnp.exp((masked - m) * scale)                         # (rows, rows) f32
        denom = jnp.sum(e, axis=-1, keepdims=True)                # (rows, 1)
        # Aggregate un-normalized, then normalize rows with an EUP reciprocal.
        agg = jnp.dot(e.astype(jnp.bfloat16), ft_bf,
                      preferred_element_type=jnp.float32)         # (rows, H)
        inv = pl.reciprocal(jnp.maximum(denom, 1e-30), approx=True)
        return agg * inv

    # conv1 + relu
    h1 = jnp.maximum(dotgat_layer(h_ref[...], w1_ref), 0.0)       # (rows, H)
    # conv2
    h2 = dotgat_layer(h1, w2_ref)                                 # (rows, H)

    # dgl.mean_nodes: per-graph mean over nodes.
    hg = jnp.mean(h2.reshape(bt, n, h2.shape[-1]), axis=1)        # (bt, H)

    # classify(concat([hg, perm], 1)) == hg @ Wc[:H] + perm @ Wc[H:] + b
    logits = (jnp.dot(hg, wch_ref[...], preferred_element_type=jnp.float32)
              + jnp.dot(perm_ref[...], wcp_ref[...], preferred_element_type=jnp.float32)
              + bc_ref[...])
    out_ref[...] = logits                                         # (bt, C)


def _mxu_rows():
    # 256-wide MXU on v6e/v7x; 128 on v5e and older.  Default to 256.
    try:
        kind = jax.devices()[0].device_kind.lower()
    except Exception:
        return 256
    for tag in ("v2", "v3", "v4", "v5"):
        if tag in kind:
            return 128
    return 256


def _pick_block_b(batch, num_nodes, target_rows):
    """Largest divisor of `batch` with bt*N <= target_rows, preferring >= 2 grid
    steps so v7x's two TensorCores both get work via the 'parallel' axis."""
    max_bt = max(1, target_rows // max(num_nodes, 1))
    divisors = [d for d in range(1, batch + 1) if batch % d == 0]
    fitting = [d for d in divisors if d <= max_bt] or [1]
    multi = [d for d in fitting if batch // d >= 2]
    return max(multi) if multi else max(fitting)


def dotgat_model(h, adj, perm_features, params):
    B, N, Fin = h.shape
    H = params["w1"].shape[1]
    P = perm_features.shape[1]
    C = params["bc"].shape[0]

    bt = _pick_block_b(B, N, _mxu_rows())
    nb = B // bt
    rows = bt * N

    # Flatten bt graphs into one (rows, F) slab per grid step.
    h3 = h.reshape(nb, rows, Fin)
    perm3 = perm_features.reshape(nb, bt, P)

    # Precomputed additive block-diagonal mask.  (adj != 0) keeps fractional /
    # weighted edges as edges (int8 truncation hazard from the old version removed).
    edge = (adj != 0).reshape(nb, bt, N, N)
    same_graph = jnp.eye(bt, dtype=bool)[None, :, None, :, None]      # (1,bt,1,bt,1)
    full = jnp.logical_and(same_graph, edge[:, :, :, None, :])        # (nb,bt,N,bt,N)
    bias = jnp.where(full.reshape(nb, rows, rows),
                     jnp.float32(0.0), jnp.float32(_NEG_INF))

    bc2 = params["bc"].reshape(1, C).astype(jnp.float32)

    # Bound the per-step VMEM budget (never below the 32 MiB scoped default,
    # never above v7x's 64 MiB physical VMEM).
    f32 = 4
    blk_elems = (rows * Fin + rows * rows + bt * P
                 + Fin * H + H * H + H * C + P * C + C + bt * C)
    interm_elems = 4 * rows * rows + 8 * rows * H
    vmem_limit = int(min(64 << 20,
                         max(32 << 20,
                             (2 * blk_elems + interm_elems) * f32 + (8 << 20))))

    kernel = functools.partial(_dotgat_kernel, block_b=bt, num_nodes=N)
    out = pl.pallas_call(
        kernel,
        out_shape=jax.ShapeDtypeStruct((nb, bt, C), jnp.float32),
        grid_spec=pltpu.PrefetchScalarGridSpec(
            num_scalar_prefetch=0,
            grid=(nb,),
            in_specs=[
                pl.BlockSpec((None, rows, Fin), lambda g: (g, 0, 0)),   # node rows
                pl.BlockSpec((None, rows, rows), lambda g: (g, 0, 0)),  # block-diag mask
                pl.BlockSpec((None, bt, P), lambda g: (g, 0, 0)),       # perm features
                pl.BlockSpec((Fin, H), lambda g: (0, 0)),               # conv1.fc weight
                pl.BlockSpec((H, H), lambda g: (0, 0)),                 # conv2.fc weight
                pl.BlockSpec((H, C), lambda g: (0, 0)),                 # classify W[:H]
                pl.BlockSpec((P, C), lambda g: (0, 0)),                 # classify W[H:]
                pl.BlockSpec((1, C), lambda g: (0, 0)),                 # classify bias
            ],
            out_specs=pl.BlockSpec((None, bt, C), lambda g: (g, 0, 0)),
        ),
        compiler_params=pltpu.CompilerParams(
            dimension_semantics=("parallel",),   # graph blocks are independent
            vmem_limit_bytes=vmem_limit),
    )(h3, bias, perm3, params["w1"], params["w2"],
      params["wc_h"], params["wc_p"], bc2)
    return out.reshape(B, C)


# ----------------------------- pure-JAX reference -----------------------------

def _layer_ref(x, w, mask, *, match_kernel_precision):
    H = w.shape[1]
    scale = 1.0 / (float(H) ** 0.5)
    ft = jnp.einsum("bnf,fh->bnh", x, w)
    ft_c = ft.astype(jnp.bfloat16) if match_kernel_precision else ft
    s = jnp.einsum("bvh,buh->bvu", ft_c, ft_c, preferred_element_type=jnp.float32)
    masked = jnp.where(mask, s, _NEG_INF)
    m = jnp.max(masked, axis=-1, keepdims=True)
    e = jnp.where(mask, jnp.exp((masked - m) * scale), 0.0)
    denom = jnp.maximum(jnp.sum(e, axis=-1, keepdims=True), 1e-30)
    if match_kernel_precision:
        agg = jnp.einsum("bvu,buh->bvh", e.astype(jnp.bfloat16), ft_c,
                         preferred_element_type=jnp.float32)
    else:
        agg = jnp.einsum("bvu,buh->bvh", e, ft)
    return agg / denom


def dotgat_model_ref(h, adj, perm_features, params, *, match_kernel_precision=False):
    """Pure-JAX reference.  match_kernel_precision=True mirrors the kernel's
    intentional bf16-MXU-operand choice (exact division instead of approx recip)."""
    mask = adj != 0
    h1 = jnp.maximum(
        _layer_ref(h, params["w1"], mask,
                   match_kernel_precision=match_kernel_precision), 0.0)
    h2 = _layer_ref(h1, params["w2"], mask,
                    match_kernel_precision=match_kernel_precision)
    hg = jnp.mean(h2, axis=1)                                     # (B, H)
    combined = jnp.concatenate([hg, perm_features], axis=1)
    wc = jnp.concatenate([params["wc_h"], params["wc_p"]], axis=0)
    return combined @ wc + params["bc"][None, :]


if __name__ == "__main__":
    # Small shapes consistent with the module's forward.
    B = 2            # graphs in the batch
    N = 16           # nodes per graph
    INPUT_DIM = 16
    HIDDEN_DIM = 32
    NUM_CLASSES = 4
    NUM_HEADS = 1    # see TODO(synk) above
    PERM_LENGTH = 8

    key = jax.random.PRNGKey(0)
    k_h, k_adj, k_perm, k_w1, k_w2, k_wc, k_bc = jax.random.split(key, 7)

    h = jax.random.normal(k_h, (B, N, INPUT_DIM), dtype=jnp.float32)
    # Random sparse-ish adjacency + self loops (every node has in-degree >= 1,
    # matching DGL's allow_zero_in_degree=False requirement).
    adj = (jax.random.uniform(k_adj, (B, N, N)) < 0.3).astype(jnp.float32)
    adj = jnp.maximum(adj, jnp.eye(N, dtype=jnp.float32)[None])
    perm_features = jax.random.normal(k_perm, (B, PERM_LENGTH), dtype=jnp.float32)

    # Deterministic parameter init (DotGatConv.fc has no bias; classifier has bias).
    params = {
        "w1": jax.random.normal(k_w1, (INPUT_DIM, HIDDEN_DIM * NUM_HEADS),
                                dtype=jnp.float32) * (1.0 / np.sqrt(INPUT_DIM)),
        "w2": jax.random.normal(k_w2, (HIDDEN_DIM, HIDDEN_DIM * NUM_HEADS),
                                dtype=jnp.float32) * (1.0 / np.sqrt(HIDDEN_DIM)),
    }
    wc = jax.random.normal(k_wc, (HIDDEN_DIM + PERM_LENGTH, NUM_CLASSES),
                           dtype=jnp.float32) * (1.0 / np.sqrt(HIDDEN_DIM + PERM_LENGTH))
    params["wc_h"] = wc[:HIDDEN_DIM]
    params["wc_p"] = wc[HIDDEN_DIM:]
    params["bc"] = jax.random.normal(k_bc, (NUM_CLASSES,), dtype=jnp.float32) * 0.01

    out = dotgat_model(h, adj, perm_features, params)
    out = jax.block_until_ready(out)

    # 1) Tight check against a reference that mirrors the kernel's bf16-MXU precision.
    ref_matched = jax.block_until_ready(
        dotgat_model_ref(h, adj, perm_features, params, match_kernel_precision=True))
    np.testing.assert_allclose(np.asarray(out), np.asarray(ref_matched),
                               rtol=1e-2, atol=1e-2)
    # 2) Loose sanity check against the exact-f32 module semantics (bound accounts for
    #    bf16 MXU operands + approx reciprocal).
    ref_f32 = jax.block_until_ready(
        dotgat_model_ref(h, adj, perm_features, params, match_kernel_precision=False))
    np.testing.assert_allclose(np.asarray(out), np.asarray(ref_f32),
                               rtol=1.5e-1, atol=1.5e-1)

    print("KERNEL_OK")
</pallas_src>

<mosaic_0001>
module attributes {stable_mosaic.version = 11 : i64} {
  func.func @_dotgat_kernel(%arg0: i32, %arg1: memref<1x16x16xf32, #tpu.memory_space<vmem>>, %arg2: memref<1x16x16xf32, #tpu.memory_space<vmem>>, %arg3: memref<1x1x8xf32, #tpu.memory_space<vmem>>, %arg4: memref<16x32xf32, #tpu.memory_space<vmem>>, %arg5: memref<32x32xf32, #tpu.memory_space<vmem>>, %arg6: memref<32x4xf32, #tpu.memory_space<vmem>>, %arg7: memref<8x4xf32, #tpu.memory_space<vmem>>, %arg8: memref<1x4xf32, #tpu.memory_space<vmem>>, %arg9: memref<1x1x4xf32, #tpu.memory_space<vmem>>) attributes {dimension_semantics = [#tpu.dimension_semantics<parallel>], iteration_bounds = array<i64: 2>, scalar_prefetch = 0 : i64, scratch_operands = 0 : i64, tpu.core_type = #tpu.core_type<tc>, window_params = [{transform_indices = @transform_0, window_bounds = array<i64: 1, 16, 16>}, {transform_indices = @transform_1, window_bounds = array<i64: 1, 16, 16>}, {transform_indices = @transform_2, window_bounds = array<i64: 1, 1, 8>}, {pipeline_mode = #tpu.pipeline_mode<synchronous>, transform_indices = @transform_3, window_bounds = array<i64: 16, 32>}, {pipeline_mode = #tpu.pipeline_mode<synchronous>, transform_indices = @transform_4, window_bounds = array<i64: 32, 32>}, {pipeline_mode = #tpu.pipeline_mode<synchronous>, transform_indices = @transform_5, window_bounds = array<i64: 32, 4>}, {pipeline_mode = #tpu.pipeline_mode<synchronous>, transform_indices = @transform_6, window_bounds = array<i64: 8, 4>}, {pipeline_mode = #tpu.pipeline_mode<synchronous>, transform_indices = @transform_7, window_bounds = array<i64: 1, 4>}, {transform_indices = @transform_8, window_bounds = array<i64: 1, 1, 4>}]} {
    %c0 = arith.constant 0 : index
    %c0_0 = arith.constant 0 : index
    %c0_1 = arith.constant 0 : index
    %0 = vector.load %arg2[%c0, %c0_0, %c0_1] : memref<1x16x16xf32, #tpu.memory_space<vmem>>, vector<1x16x16xf32>
    %1 = vector.shape_cast %0 : vector<1x16x16xf32> to vector<16x16xf32>
    %c0_2 = arith.constant 0 : index
    %c0_3 = arith.constant 0 : index
    %c0_4 = arith.constant 0 : index
    %2 = vector.load %arg1[%c0_2, %c0_3, %c0_4] : memref<1x16x16xf32, #tpu.memory_space<vmem>>, vector<1x16x16xf32>
    %3 = vector.shape_cast %2 : vector<1x16x16xf32> to vector<16x16xf32>
    %c0_5 = arith.constant 0 : index
    %c0_6 = arith.constant 0 : index
    %4 = vector.load %arg4[%c0_5, %c0_6] : memref<16x32xf32, #tpu.memory_space<vmem>>, vector<16x32xf32>
    %cst = arith.constant dense<0.000000e+00> : vector<16x32xf32>
    %5 = tpu.matmul %3, %4, %cst {dimension_numbers = #tpu.dot_dimension_numbers<[1], [0], [0], [1], [0, 0, 1, 1], [], []>} : vector<16x16xf32>, vector<16x32xf32>, vector<16x32xf32> -> vector<16x32xf32>
    %6 = arith.truncf %5 : vector<16x32xf32> to vector<16x32xbf16>
    %cst_7 = arith.constant dense<0.000000e+00> : vector<16x16xf32>
    %7 = tpu.matmul %6, %6, %cst_7 {dimension_numbers = #tpu.dot_dimension_numbers<[1], [1], [0], [0], [0, 0, 1, 0], [], []>} : vector<16x32xbf16>, vector<16x32xbf16>, vector<16x16xf32> -> vector<16x16xf32>
    %8 = arith.addf %7, %1 : vector<16x16xf32>
    %cst_8 = arith.constant dense<0xFF800000> : vector<16xf32>
    %9 = vector.multi_reduction <maximumf>, %8, %cst_8 [1] : vector<16x16xf32> to vector<16xf32>
    %10 = vector.shape_cast %9 : vector<16xf32> to vector<16x1xf32>
    %11 = vector.broadcast %10 : vector<16x1xf32> to vector<16x16xf32>
    %12 = arith.subf %8, %11 : vector<16x16xf32>
    %cst_9 = arith.constant 0.176776692 : f32
    %13 = vector.broadcast %cst_9 : f32 to vector<16x16xf32>
    %14 = arith.mulf %12, %13 : vector<16x16xf32>
    %15 = math.exp %14 : vector<16x16xf32>
    %cst_10 = arith.constant dense<0.000000e+00> : vector<16xf32>
    %16 = vector.multi_reduction <add>, %15, %cst_10 [1] : vector<16x16xf32> to vector<16xf32>
    %17 = vector.shape_cast %16 : vector<16xf32> to vector<16x1xf32>
    %18 = arith.truncf %15 : vector<16x16xf32> to vector<16x16xbf16>
    %cst_11 = arith.constant dense<0.000000e+00> : vector<16x32xf32>
    %19 = tpu.matmul %18, %6, %cst_11 {dimension_numbers = #tpu.dot_dimension_numbers<[1], [0], [0], [1], [0, 0, 1, 1], [], []>} : vector<16x16xbf16>, vector<16x32xbf16>, vector<16x32xf32> -> vector<16x32xf32>
    %cst_12 = arith.constant 1.000000e-30 : f32
    %20 = vector.broadcast %cst_12 : f32 to vector<16x1xf32>
    %21 = arith.maximumf %17, %20 : vector<16x1xf32>
    %22 = tpu.reciprocal %21 {approx = true} : vector<16x1xf32> -> vector<16x1xf32>
    %23 = vector.broadcast %22 : vector<16x1xf32> to vector<16x32xf32>
    %24 = arith.mulf %19, %23 : vector<16x32xf32>
    %cst_13 = arith.constant 0.000000e+00 : f32
    %25 = vector.broadcast %cst_13 : f32 to vector<16x32xf32>
    %26 = arith.maximumf %24, %25 : vector<16x32xf32>
    %c0_14 = arith.constant 0 : index
    %c0_15 = arith.constant 0 : index
    %27 = vector.load %arg5[%c0_14, %c0_15] : memref<32x32xf32, #tpu.memory_space<vmem>>, vector<32x32xf32>
    %cst_16 = arith.constant dense<0.000000e+00> : vector<16x32xf32>
    %28 = tpu.matmul %26, %27, %cst_16 {dimension_numbers = #tpu.dot_dimension_numbers<[1], [0], [0], [1], [0, 0, 1, 1], [], []>} : vector<16x32xf32>, vector<32x32xf32>, vector<16x32xf32> -> vector<16x32xf32>
    %29 = arith.truncf %28 : vector<16x32xf32> to vector<16x32xbf16>
    %cst_17 = arith.constant dense<0.000000e+00> : vector<16x16xf32>
    %30 = tpu.matmul %29, %29, %cst_17 {dimension_numbers = #tpu.dot_dimension_numbers<[1], [1], [0], [0], [0, 0, 1, 0], [], []>} : vector<16x32xbf16>, vector<16x32xbf16>, vector<16x16xf32> -> vector<16x16xf32>
    %31 = arith.addf %30, %1 : vector<16x16xf32>
    %cst_18 = arith.constant dense<0xFF800000> : vector<16xf32>
    %32 = vector.multi_reduction <maximumf>, %31, %cst_18 [1] : vector<16x16xf32> to vector<16xf32>
    %33 = vector.shape_cast %32 : vector<16xf32> to vector<16x1xf32>
    %34 = vector.broadcast %33 : vector<16x1xf32> to vector<16x16xf32>
    %35 = arith.subf %31, %34 : vector<16x16xf32>
    %cst_19 = arith.constant 0.176776692 : f32
    %36 = vector.broadcast %cst_19 : f32 to vector<16x16xf32>
    %37 = arith.mulf %35, %36 : vector<16x16xf32>
    %38 = math.exp %37 : vector<16x16xf32>
    %cst_20 = arith.constant dense<0.000000e+00> : vector<16xf32>
    %39 = vector.multi_reduction <add>, %38, %cst_20 [1] : vector<16x16xf32> to vector<16xf32>
    %40 = vector.shape_cast %39 : vector<16xf32> to vector<16x1xf32>
    %41 = arith.truncf %38 : vector<16x16xf32> to vector<16x16xbf16>
    %cst_21 = arith.constant dense<0.000000e+00> : vector<16x32xf32>
    %42 = tpu.matmul %41, %29, %cst_21 {dimension_numbers = #tpu.dot_dimension_numbers<[1], [0], [0], [1], [0, 0, 1, 1], [], []>} : vector<16x16xbf16>, vector<16x32xbf16>, vector<16x32xf32> -> vector<16x32xf32>
    %cst_22 = arith.constant 1.000000e-30 : f32
    %43 = vector.broadcast %cst_22 : f32 to vector<16x1xf32>
    %44 = arith.maximumf %40, %43 : vector<16x1xf32>
    %45 = tpu.reciprocal %44 {approx = true} : vector<16x1xf32> -> vector<16x1xf32>
    %46 = vector.broadcast %45 : vector<16x1xf32> to vector<16x32xf32>
    %47 = arith.mulf %42, %46 : vector<16x32xf32>
    %48 = vector.shape_cast %47 : vector<16x32xf32> to vector<1x16x32xf32>
    %cst_23 = arith.constant dense<0.000000e+00> : vector<1x32xf32>
    %49 = vector.multi_reduction <add>, %48, %cst_23 [1] : vector<1x16x32xf32> to vector<1x32xf32>
    %cst_24 = arith.constant 1.600000e+01 : f32
    %50 = vector.broadcast %cst_24 : f32 to vector<1x32xf32>
    %51 = arith.divf %49, %50 : vector<1x32xf32>
    %c0_25 = arith.constant 0 : index
    %c0_26 = arith.constant 0 : index
    %52 = vector.load %arg6[%c0_25, %c0_26] : memref<32x4xf32, #tpu.memory_space<vmem>>, vector<32x4xf32>
    %cst_27 = arith.constant dense<0.000000e+00> : vector<1x4xf32>
    %53 = tpu.matmul %51, %52, %cst_27 {dimension_numbers = #tpu.dot_dimension_numbers<[1], [0], [0], [1], [0, 0, 1, 1], [], []>} : vector<1x32xf32>, vector<32x4xf32>, vector<1x4xf32> -> vector<1x4xf32>
    %c0_28 = arith.constant 0 : index
    %c0_29 = arith.constant 0 : index
    %c0_30 = arith.constant 0 : index
    %54 = vector.load %arg3[%c0_28, %c0_29, %c0_30] : memref<1x1x8xf32, #tpu.memory_space<vmem>>, vector<1x1x8xf32>
    %55 = vector.shape_cast %54 : vector<1x1x8xf32> to vector<1x8xf32>
    %c0_31 = arith.constant 0 : index
    %c0_32 = arith.constant 0 : index
    %56 = vector.load %arg7[%c0_31, %c0_32] : memref<8x4xf32, #tpu.memory_space<vmem>>, vector<8x4xf32>
    %cst_33 = arith.constant dense<0.000000e+00> : vector<1x4xf32>
    %57 = tpu.matmul %55, %56, %cst_33 {dimension_numbers = #tpu.dot_dimension_numbers<[1], [0], [0], [1], [0, 0, 1, 1], [], []>} : vector<1x8xf32>, vector<8x4xf32>, vector<1x4xf32> -> vector<1x4xf32>
    %58 = arith.addf %53, %57 : vector<1x4xf32>
    %c0_34 = arith.constant 0 : index
    %c0_35 = arith.constant 0 : index
    %59 = vector.load %arg8[%c0_34, %c0_35] : memref<1x4xf32, #tpu.memory_space<vmem>>, vector<1x4xf32>
    %60 = arith.addf %58, %59 : vector<1x4xf32>
    %c0_36 = arith.constant 0 : index
    %c0_37 = arith.constant 0 : index
    %c0_38 = arith.constant 0 : index
    %61 = vector.load %arg9[%c0_36, %c0_37, %c0_38] : memref<1x1x4xf32, #tpu.memory_space<vmem>>, vector<1x1x4xf32>
    %62 = vector.shape_cast %61 : vector<1x1x4xf32> to vector<1x4xf32>
    %63 = vector.shape_cast %60 : vector<1x4xf32> to vector<1x1x4xf32>
    tpu.vector_store %arg9[%c0_36, %c0_37, %c0_38], %63 {strides = array<i32>} : memref<1x1x4xf32, #tpu.memory_space<vmem>>, vector<1x1x4xf32>,
    return
  }
  func.func @transform_0(%arg0: i32) -> (i32, i32, i32) {
    %c0_i32 = arith.constant 0 : i32
    %c0_i32_0 = arith.constant 0 : i32
    %c0_i32_1 = arith.constant 0 : i32
    return %arg0, %c0_i32, %c0_i32_0 : i32, i32, i32
  }
  func.func @transform_1(%arg0: i32) -> (i32, i32, i32) {
    %c0_i32 = arith.constant 0 : i32
    %c0_i32_0 = arith.constant 0 : i32
    %c0_i32_1 = arith.constant 0 : i32
    return %arg0, %c0_i32, %c0_i32_0 : i32, i32, i32
  }
  func.func @transform_2(%arg0: i32) -> (i32, i32, i32) {
    %c0_i32 = arith.constant 0 : i32
    %c0_i32_0 = arith.constant 0 : i32
    %c0_i32_1 = arith.constant 0 : i32
    return %arg0, %c0_i32, %c0_i32_0 : i32, i32, i32
  }
  func.func @transform_3(%arg0: i32) -> (i32, i32) {
    %c0_i32 = arith.constant 0 : i32
    %c0_i32_0 = arith.constant 0 : i32
    %c0_i32_1 = arith.constant 0 : i32
    return %c0_i32, %c0_i32_0 : i32, i32
  }
  func.func @transform_4(%arg0: i32) -> (i32, i32) {
    %c0_i32 = arith.constant 0 : i32
    %c0_i32_0 = arith.constant 0 : i32
    %c0_i32_1 = arith.constant 0 : i32
    return %c0_i32, %c0_i32_0 : i32, i32
  }
  func.func @transform_5(%arg0: i32) -> (i32, i32) {
    %c0_i32 = arith.constant 0 : i32
    %c0_i32_0 = arith.constant 0 : i32
    %c0_i32_1 = arith.constant 0 : i32
    return %c0_i32, %c0_i32_0 : i32, i32
  }
  func.func @transform_6(%arg0: i32) -> (i32, i32) {
    %c0_i32 = arith.constant 0 : i32
    %c0_i32_0 = arith.constant 0 : i32
    %c0_i32_1 = arith.constant 0 : i32
    return %c0_i32, %c0_i32_0 : i32, i32
  }
  func.func @transform_7(%arg0: i32) -> (i32, i32) {
    %c0_i32 = arith.constant 0 : i32
    %c0_i32_0 = arith.constant 0 : i32
    %c0_i32_1 = arith.constant 0 : i32
    return %c0_i32, %c0_i32_0 : i32, i32
  }
  func.func @transform_8(%arg0: i32) -> (i32, i32, i32) {
    %c0_i32 = arith.constant 0 : i32
    %c0_i32_0 = arith.constant 0 : i32
    %c0_i32_1 = arith.constant 0 : i32
    return %arg0, %c0_i32, %c0_i32_0 : i32, i32, i32
  }
}

</mosaic_0001>

<bundles_post_ra>
// kernel: tpu_custom_call.1
= control target key start
LH: loop header
LB: loop body
LE: loop exit
PB: predicated region body
PF: predicated region fallthrough
CT: control target
= control target key end

     0   :  { %s1316_s0 = inlined_call_operand.vmem [shape: f32[2,16,16], index: 0, kind: input, shape index: {}]   ;;  %s1317_s1 = inlined_call_operand.hbm [shape: f32[2,16,16], index: 1, kind: input, shape index: {}]   ;;  %s1318_s2 = inlined_call_operand.vmem [shape: f32[2,1,8], index: 2, kind: input, shape index: {}]   ;;  %s1319_s3 = inlined_call_operand.hbm [shape: f32[16,32], index: 3, kind: input, shape index: {}]   ;;  %s1320_s4 = inlined_call_operand.hbm [shape: f32[32,32], index: 4, kind: input, shape index: {}]   ;;  %s1321_s5 = inlined_call_operand.vmem [shape: f32[32,4], index: 5, kind: input, shape index: {}]   ;;  %s1322_s6 = inlined_call_operand.vmem [shape: f32[8,4], index: 6, kind: input, shape index: {}]   ;;  %s1323_s7 = inlined_call_operand.vmem [shape: f32[1,4], index: 7, kind: input, shape index: {}]   ;;  %s1324_s8 = inlined_call_operand.hbm [shape: f32[2,1,4], index: 8, kind: output, shape index: {}]  }
   0x1   :  { %1327 = sst [smem:[#allocation12_spill]] %s1319_s3 }
   0x2   :  { %1328 = sst [smem:[#allocation13_spill]] %s1320_s4 }
   0x3   :  { %13 = vsyncpa [#allocation3], 0 }
   0x4   :  { %15 = vsyncpa [#allocation3 + $0x1], 0 }
   0x5   :  { %16 = vsyncpa [#allocation6], 0 }
   0x6   :  { %17 = vsyncpa [#allocation4], 0 }
   0x7   :  { %19 = vsyncpa [#allocation4 + $0x1], 0  ;;  %s1110_s27 = smov 0   ;;  %s1112_s28 = smov 0  }
   0x8   :  { %s1114_s29 = smov 0   ;;  %s1116_s30 = smov 0  }
   0x9 LB: > { %s1131_s9 = sadd.s32 4294967295, %s1058_s30   ;;  %s782_s10 = sadd.s32 4294967294, %s1058_s30   ;;  %s1058_s30 = sphi %s1116_s30, %s1342_s30   ;;  %s1054_s29 = sphi %s1114_s29, %s1341_s29   ;;  %s1050_s28 = sphi %s1112_s28, %s1340_s28   ;;  %s1046_s27 = sphi %s1110_s27, %s1339_s27  }
   0xa   : > { %p71_p0 = scmp.ne.s32.totalorder %s1050_s28, %s1046_s27  ;;  %p72_p1 = scmp.eq.s32.totalorder %s1131_s9, 0 }
   0xb   : > { %p226_p2 = scmp.eq.s32.totalorder %s1131_s9, 1  ;;  %p232_p3 = scmp.eq.s32.totalorder %s782_s10, 1 }
   0xc   : > { %p1140_p4 = por %p72_p1, %p71_p0  ;;  %p783_p5 = scmp.ge.s32.totalorder %s1058_s30, 1 }
   0xd   : > { %p1145_p6 = por %p232_p3, %p71_p0  ;;  %p239_p7 = scmp.lt.s32.totalorder %s1058_s30, 3 }
   0xe   : > { %s1331_s3 = sld [smem:[#allocation12_spill]]  ;;  %s1060_s17 = smov [#allocation5]  }
   0xf   : > { %p1153_p8 = pnand %p783_p5, %p239_p7  ;;  %s252_s18 = sshll.u32 %s1060_s17, 4  ;;  %s253_s18 = int_to_ptr.vmem [resolvable:$true] %s252_s18 }
  0x10   : > { %s1333_s4 = sld [smem:[#allocation13_spill]]  ;;  %s1325_s22 = smov 128  }
  0x11   : > { %p822_p9 = pneg %p1153_p8  ;;  %s1326_s23 = smov 8  }
  0x12   : > { %s1063_s24 = smov [#allocation7]   ;;  %s1172_s26 = sadd.s32 1, %s1058_s30  }
  0x13   : > { %p823_p10 = pnand %p822_p9, %p72_p1  ;;  %s266_s25 = sshll.u32 %s1063_s24, 4  ;;  %s267_s25 = int_to_ptr.vmem [resolvable:$true] %s266_s25 }
  0x14   : > { %s250_s15 = sshll.u32 %s1331_s3, 4  ;;  %s58_s10 = sadd.s32 1, %s1054_s29  ;;  %s251_s15 = int_to_ptr.hbm [resolvable:$true] %s250_s15 }
  0x15   : > { %825 = dma.hbm_to_vmem [thread:$0]  (!%p823_p10), %s251_s15, 256, %s253_s18, [#allocation6], %s1325_s22, %s1325_s22, %s1326_s23  }
  0x16   : > { %s264_s21 = sshll.u32 %s1333_s4, 4  ;;  %s55_s13 = ssub.s32 %s1058_s30, %s1172_s26  ;;  %s265_s21 = int_to_ptr.hbm [resolvable:$true] %s264_s21 }
  0x17   : > { %828 = dma.hbm_to_vmem [thread:$0]  (!%p823_p10), %s265_s21, 512, %s267_s25, [#allocation6], %s1325_s22, %s1325_s22, %s1326_s23  }
  0x18   : > { %p65_p12 = scmp.ne.s32.totalorder %s1054_s29, %s1050_s28  ;;  %p56_p13 = scmp.eq.s32.totalorder %s55_s13, 0 }
  0x19   : > { %p66_p0 = scmp.eq.s32.totalorder %s1058_s30, 0  ;;  %p839_p5 = scmp.lt.s32.totalorder %s1058_s30, 2 }
  0x1a   : > { %p1182_p3 = por %p226_p2, %p65_p12  ;;  %s297_s17 = sand.u32 1, %s1054_s29  }
  0x1b   : > { %s1188_s15 = scalar_select %p56_p13, %s1054_s29, %s58_s10  }
  0x1c   : > { %p67_p7 = por %p66_p0, %p65_p12  ;;  %s787_s18 = sshll.u32 %s297_s17, 4 }
  0x1d   : > { %s808_s19 = sshll.u32 %s1058_s30, 4  ;;  %s301_s25 = scalar_lea.vmem [#allocation2], %s787_s18 }
  0x1e   : > { %s306_s24 = scalar_lea.hbm %s1317_s1, %s808_s19  ;;  %s309_s22 = sshll.u32 %s301_s25, 4  ;;  %s310_s22 = int_to_ptr.vmem [resolvable:$true] %s309_s22 }
  0x1f   : > { %s307_s13 = sshll.u32 %s306_s24, 4  ;;  %p1195_p2 = pnand %p839_p5, %p67_p7  ;;  %s308_s13 = int_to_ptr.hbm [resolvable:$true] %s307_s13 }
  0x20   : > { %s298_s10 = scalar_lea.sflag [#allocation3], %s297_s17  ;;  %s958_s3 = sshra.s32 %s308_s13, 4  ;;  %s959_s3 = int_to_ptr.hbm [resolvable:$true] %s958_s3 }
  0x21   : > { %s960_s4 = scalar_lea.hbm %s959_s3, 16  ;;  %p962_p10 = pneg %p1195_p2 }
  0x22   : > { %p961_p9 = scmp.ne.s32.totalorder %s959_s3, %s960_s4  ;;  %s965_s20 = scalar_lea.hbm %s1317_s1, 32 }
  0x23   : > { %p966_p0 = scmp.lt.s32.totalorder %s959_s3, %s1317_s1  ;;  %p967_p5 = scmp.lt.s32.totalorder %s965_s20, %s960_s4 }
  0x24   : > { %p963_p12 = pnand %p962_p10, %p961_p9 }
  0x25   : > { %p968_p7 = por %p967_p5, %p966_p0 }
  0x26   : > { %p964_p13 = pneg %p963_p12 }
  0x28   : > { %p969_p11 = pnand %p968_p7, %p964_p13 }
  0x2a   : > { %972 = shalt.err (!%p969_p11)
}
  0x2b   : > { %s1336_s17 = smov 8   ;;  %s1337_s25 = smov 128  }
  0x2c   : > { %832 = dma.hbm_to_vmem [thread:$0]  (!%p1195_p2), %s308_s13, 256, %s310_s22, %s298_s10, %s1337_s25, %s1337_s25, %s1336_s17  }
  0x2d   : > { %327 = sbr.rel (%p1153_p8) target bundleno = 1324 (0x52c), region = 52  ;;  %s1215_s19 = sand.u32 (!%p1153_p8), 1, %s1050_s28  }
  0x2e   : > { %s791_s3 = sshll.u32 (!%p1153_p8), %s1215_s19, 4  ;;  %s330_s4 = scalar_lea.sflag (!%p1153_p8), [#allocation3], %s1215_s19 }
  0x2f   : > { %s1219_s18 = scalar_lea.vmem (!%p1153_p8), [#allocation2], %s791_s3 }
  0x32   : > { %1033 = dma.done.wait (%p1140_p4), %s330_s4, 256  }
  0x33   : > { %1035 = vsyncadd (%p1140_p4), %s330_s4, 4294967040 }
  0x34   : > { %1037 = dma.done.wait (%p72_p1), [#allocation6], 768  }
  0x35   : > { %1039 = vsyncadd (%p72_p1), [#allocation6], 4294966528  ;;  %p384_p8 = scmp.lt.s32.totalorder %s1131_s9, 1  ;;  %v398_v0 = vld [vmem:[#allocation5 + $0x8] sm:$0xff]  ;;  %v397_v1 = vld [vmem:[#allocation5] sm:$0xff]  ;;  %vm399_vm0 = vcmask 130048   ;;  %s672_s20 = scalar_lea.hbm %s1324_s8, %s1131_s9 }
  0x36   : > { %420 = vmatpush.msra.mxu0 %v398_v0  ;;  %vm430_vm1 = vcmask 261120   ;;  %v393_v8 = vld [vmem:[%s1219_s18] sm:$0xff]  ;;  %v394_v12 = vld [vmem:[%s1219_s18 + $0x8] sm:$0xff]  ;;  %vm612_vm2 = vcmask 64512   ;;  %s383_s17 = scalar_lea.vmem [#allocation8], %s1215_s19  ;;  %s676_s3 = sshll.u32 %s672_s20, 4  ;;  %s677_s3 = int_to_ptr.hbm [resolvable:$true] %s676_s3 }
  0x37   : > { %s1231_s16 = scalar_select %p384_p8, %s1131_s9, 1  ;;  %v497_v29 = vld [vmem:[#allocation7 + $0x18] sm:$0xff]  ;;  %v496_v30 = vld [vmem:[#allocation7 + $0x10] sm:$0xff]  ;;  %v495_v31 = vld [vmem:[#allocation7 + $0x8] sm:$0xff]  ;;  %vm661_vm4 = vcmask 24576  }
  0x38   : > { %421 = vmatpush.msra.mxu0 %v397_v1  ;;  %516 = vmatpush.msra.mxu3 %v497_v29  ;;  %v494_v32 = vld [vmem:[#allocation7] sm:$0xff]  ;;  %s674_s25 = sshll.u32 %s383_s17, 4  ;;  %s664_s4 = scalar_lea.sflag [#allocation4], %s1215_s19  ;;  %s675_s25 = int_to_ptr.vmem [resolvable:$true] %s674_s25 }
  0x39   : > { %s809_s22 = sshll.u32 %s1231_s16, 4  ;;  %s1002_s18 = sshra.s32 %s677_s3, 4  ;;  %s1003_s18 = int_to_ptr.hbm [resolvable:$true] %s1002_s18 }
  0x3a   : > { %s388_s10 = scalar_lea.vmem %s1316_s0, %s809_s22  ;;  %517 = vmatpush.msra.mxu3 %v496_v30  ;;  %s1004_s9 = scalar_lea.hbm %s1003_s18, 1 }
  0x3b   : > { %v395_v2 = vld [vmem:[%s388_s10] sm:$0xff]  ;;  %v396_v3 = vld [vmem:[%s388_s10 + $0x8] sm:$0xff]  ;;  %s391_s10 = scalar_lea.vmem %s1318_s2, %s1231_s16  ;;  %p1005_p1 = scmp.ne.s32.totalorder %s1003_s18, %s1004_s9 }
  0x3c   : > { %796 = vmatmul.msk.f32.vlgmr.msra.gmra.mxu0 %vm399_vm0, %v395_v2  ;;  %518 = vmatpush.msra.mxu3 %v495_v31  ;;  %s1008_s13 = scalar_lea.hbm %s1324_s8, 2  ;;  %p1009_p2 = scmp.lt.s32.totalorder %s1003_s18, %s1324_s8 }
  0x3d   : > { %p1006_p4 = pnand %p1005_p1, %p1182_p3  ;;  %p1010_p9 = scmp.lt.s32.totalorder %s1008_s13, %s1004_s9 }
  0x3e   : > { %519 = vmatpush.msra.mxu3 %v494_v32 }
  0x3f   : > { %p1007_p11 = pneg %p1006_p4  ;;  %p1011_p10 = por %p1010_p9, %p1009_p2 }
  0x41   : > { %p1012_p12 = pnand %p1011_p10, %p1007_p11 }
  0x44   : > { %797 = vmatmul.msk.f32.gmra.mxu0 %vm399_vm0, %v396_v3 }
  0xb9   : > { %v423_v4 = vpop.f32.mrf.mxu0 }
  0xc1   : > { %v426_v5 = vpop.f32.mrf.mxu0 }
  0xc2   : > { %v429_v6 = vpack.c.bf16 %v426_v5, %v423_v4  ;;  %v609_v4 = vld [vmem:[%s1321_s5 + $0x18] sm:$0xff]  ;;  %v608_v5 = vld [vmem:[%s1321_s5 + $0x10] sm:$0xff] }
  0xc3   : > { %651 = vmatpush.msrb.mxu3 %v609_v4 }
  0xc4   : > { %479 = vmatpush.bf16.msra.mxu2 %v429_v6  ;;  %v432_v7 = vsel %vm430_vm1, %v429_v6, 0 }
  0xc5   : > { %441 = vmatpush.bf16.xpose.msra.mxu1 %v432_v7  ;;  %v611_v7 = vld [vmem:[%s1322_s6] sm:$0xff]  ;;  %652 = vmatpush.msrb.mxu3 %v608_v5 }
  0xcc   : > { %798 = vmatmul.msk.bf16.vlgmr.msra.gmra.mxu1 %vm430_vm1, %v429_v6  ;;  %v607_v6 = vld [vmem:[%s1321_s5 + $0x8] sm:$0xff] }
  0xcd   : > { %631 = vmatpush.msrb.mxu1 %v611_v7  ;;  %653 = vmatpush.msrb.mxu3 %v607_v6 }
 0x149   : > { %v443_v9 = vpop.f32.mrf.mxu1 }
 0x14a   : > { %v444_v10 = vadd.f32 %v443_v9, %v393_v8 }
 0x14c   : > { %v448_v11 = vsel %vm399_vm0, %v444_v10, -inf }
 0x14d   : > { %449 = vmax.xlane.f32.xlu0 %v448_v11 }
 0x151   : > { %v445_v13 = vpop.f32.mrf.mxu1 }
 0x152   : > { %v446_v14 = vadd.f32 %v445_v13, %v394_v12 }
 0x154   : > { %v451_v15 = vsel %vm399_vm0, %v446_v14, -inf }
 0x155   : > { %452 = vmax.xlane.f32.xlu0 %v451_v15 }
 0x1c0   : > { %v450_v16 = vpop.xlane.xlu0 %449 }
 0x1c1   : > { %v454_v17 = vsub.f32 %v444_v10, %v450_v16 }
 0x1c3   : > { %v456_v18 = vmul.f32 0.17677669, %v454_v17 }
 0x1c5   : > { %v458_v19 = vmul.f32 1.442695, %v456_v18 }
 0x1c7   : > { %880 = vpow2.f32 %v458_v19 }
 0x1c8   : > { %v453_v20 = vpop.xlane.xlu0 %452 }
 0x1c9   : > { %v455_v21 = vsub.f32 %v446_v14, %v453_v20  ;;  %v1064_v14 = vmov 16.0  }
 0x1cb   : > { %v457_v22 = vmul.f32 0.17677669, %v455_v21 }
 0x1cd   : > { %v881_v23 = vpop.eup %880  ;;  %v460_v24 = vmul.f32 1.442695, %v457_v22 }
 0x1ce   : > { %v462_v25 = vsel %vm399_vm0, %v881_v23, 0.0 }
 0x1cf   : > { %882 = vpow2.f32 %v460_v24  ;;  %463 = vadd.xlane.f32.xlu1 %v462_v25 }
 0x1d5   : > { %v883_v26 = vpop.eup %882 }
 0x1d6   : > { %v465_v27 = vsel %vm399_vm0, %v883_v26, 0.0  ;;  %v468_v28 = vpack.c.bf16 %v883_v26, %v881_v23 }
 0x1d7   : > { %466 = vadd.xlane.f32.xlu1 %v465_v27 }
 0x1d8   : > { %799 = vmatmul.msk.bf16.vlgmr.msra.gmra.mxu2 %vm399_vm0, %v468_v28 }
 0x242   : > { %v464_v33 = vpop.xlane.xlu1 %463 }
 0x243   : > { %v486_v34 = vmax.f32 %v464_v33, 1e-30 }
 0x245   : > { %884 = vrcp.f32 %v486_v34 }
 0x24a   : > { %v467_v35 = vpop.xlane.xlu1 %466 }
 0x24b   : > { %v487_v36 = vmax.f32 %v467_v35, 1e-30  ;;  %v885_v37 = vpop.eup %884 }
 0x24d   : > { %886 = vrcp.f32 %v487_v36 }
 0x253   : > { %v887_v41 = vpop.eup %886 }
 0x25b   : > { %v481_v38 = vpop.f32.mrf.mxu2 }
 0x25c   : > { %v490_v39 = vmul.f32 %v885_v37, %v481_v38 }
 0x25e   : > { %v492_v40 = vmax.f32 %v490_v39, 0.0  ;;  %v659_v39 = vld [vmem:[%s1323_s7] sm:$0x1] }
 0x260   : > { %800 = vmatmul.msk.f32.vlgmr.msra.gmra.mxu3 %vm430_vm1, %v492_v40 }
 0x263   : > { %v483_v42 = vpop.f32.mrf.mxu2 }
 0x264   : > { %v491_v43 = vmul.f32 %v887_v41, %v483_v42 }
 0x266   : > { %v493_v44 = vmax.f32 %v491_v43, 0.0 }
 0x268   : > { %801 = vmatmul.msk.f32.gmra.mxu3 %vm430_vm1, %v493_v44 }
 0x2e3   : > { %v521_v45 = vpop.f32.mrf.mxu3 }
 0x2eb   : > { %v524_v46 = vpop.f32.mrf.mxu3 }
 0x2ec   : > { %v527_v47 = vpack.c.bf16 %v524_v46, %v521_v45 }
 0x2ee   : > { %576 = vmatpush.bf16.msrb.mxu2 %v527_v47  ;;  %v529_v48 = vsel %vm430_vm1, %v527_v47, 0 }
 0x2ef   : > { %538 = vmatpush.bf16.xpose.msrb.mxu0 %v529_v48 }
 0x2f6   : > { %802 = vmatmul.msk.bf16.vlgmr.msrb.gmra.mxu0 %vm430_vm1, %v527_v47 }
 0x373   : > { %v540_v49 = vpop.f32.mrf.mxu0 }
 0x374   : > { %v541_v50 = vadd.f32 %v540_v49, %v393_v8  ;;  %v606_v8 = vld [vmem:[%s1321_s5] sm:$0xff] }
 0x375   : > { %654 = vmatpush.msrb.mxu3 %v606_v8 }
 0x376   : > { %v545_v51 = vsel %vm399_vm0, %v541_v50, -inf }
 0x377   : > { %546 = vmax.xlane.f32.xlu2 %v545_v51 }
 0x37b   : > { %v542_v52 = vpop.f32.mrf.mxu0 }
 0x37c   : > { %v543_v53 = vadd.f32 %v542_v52, %v394_v12  ;;  %v610_v12 = vld [vmem:[%s391_s10] sm:$0x1] }
 0x37d   : > { %804 = vmatmul.msk.f32.vlgmr.msrb.gmra.mxu1 %vm612_vm2, %v610_v12 }
 0x37e   : > { %v548_v54 = vsel %vm399_vm0, %v543_v53, -inf }
 0x37f   : > { %549 = vmax.xlane.f32.xlu2 %v548_v54 }
 0x3ea   : > { %v547_v55 = vpop.xlane.xlu2 %546 }
 0x3eb   : > { %v551_v56 = vsub.f32 %v541_v50, %v547_v55 }
 0x3ed   : > { %v553_v57 = vmul.f32 0.17677669, %v551_v56 }
 0x3ef   : > { %v555_v58 = vmul.f32 1.442695, %v553_v57 }
 0x3f1   : > { %888 = vpow2.f32 %v555_v58 }
 0x3f2   : > { %v550_v59 = vpop.xlane.xlu2 %549 }
 0x3f3   : > { %v552_v60 = vsub.f32 %v543_v53, %v550_v59 }
 0x3f5   : > { %v554_v61 = vmul.f32 0.17677669, %v552_v60 }
 0x3f7   : > { %v889_v62 = vpop.eup %888  ;;  %v557_v63 = vmul.f32 1.442695, %v554_v61 }
 0x3f8   : > { %v559_v0 = vsel %vm399_vm0, %v889_v62, 0.0 }
 0x3f9   : > { %890 = vpow2.f32 %v557_v63  ;;  %560 = vadd.xlane.f32.xlu0 %v559_v0 }
 0x3fa   : > { %892 = vrcp.f32 %v1064_v14  ;;  %v633_v37 = vpop.f32.mrf.mxu1 }
 0x3ff   : > { %v891_v1 = vpop.eup %890 }
 0x400   : > { %v562_v2 = vsel %vm399_vm0, %v891_v1, 0.0  ;;  %v565_v3 = vpack.c.bf16 %v891_v1, %v889_v62  ;;  %v893_v16 = vpop.eup %892 }
 0x401   : > { %563 = vadd.xlane.f32.xlu1 %v562_v2  ;;  %v599_v19 = vmul.f32 16.0, %v893_v16  ;;  %vm603_vm3 = vweird.f32 %v893_v16 }
 0x402   : > { %803 = vmatmul.msk.bf16.vlgmr.msrb.gmra.mxu2 %vm399_vm0, %v565_v3 }
 0x403   : > { %v600_v25 = vsub.f32 1.0, %v599_v19 }
 0x405   : > { %v601_v28 = vmul.f32 %v893_v16, %v600_v25 }
 0x407   : > { %v602_v31 = vadd.f32 %v893_v16, %v601_v28 }
 0x409   : > { %v604_v34 = vsel %vm603_vm3, %v893_v16, %v602_v31 }
 0x46c   : > { %v561_v9 = vpop.xlane.xlu0 %560 }
 0x46d   : > { %v583_v11 = vmax.f32 %v561_v9, 1e-30 }
 0x46f   : > { %894 = vrcp.f32 %v583_v11 }
 0x474   : > { %v564_v10 = vpop.xlane.xlu1 %563 }
 0x475   : > { %v584_v13 = vmax.f32 %v564_v10, 1e-30  ;;  %v895_v17 = vpop.eup %894 }
 0x477   : > { %896 = vrcp.f32 %v584_v13 }
 0x47d   : > { %v897_v20 = vpop.eup %896 }
 0x485   : > { %v578_v15 = vpop.f32.mrf.mxu2 }
 0x486   : > { %v587_v18 = vmul.f32 %v895_v17, %v578_v15 }
 0x488   : > { %v589_v23 = vsel %vm430_vm1, %v587_v18, 0.0 }
 0x48d   : > { %v580_v21 = vpop.f32.mrf.mxu2 }
 0x48e   : > { %v588_v22 = vmul.f32 %v897_v20, %v580_v21 }
 0x490   : > { %v590_v24 = vsel %vm430_vm1, %v588_v22, 0.0 }
 0x491   : > { %v591_v26 = vadd.f32 %v590_v24, %v589_v23 }
 0x493   : > { %v592_v27 = vrot.slane %v591_v26, 4 }
 0x495   : > { %v593_v29 = vadd.f32 %v592_v27, %v591_v26 }
 0x497   : > { %v594_v30 = vrot.slane %v593_v29, 2 }
 0x499   : > { %v595_v32 = vadd.f32 %v594_v30, %v593_v29 }
 0x49b   : > { %v596_v33 = vrot.slane %v595_v32, 1 }
 0x49d   : > { %v597_v35 = vadd.f32 %v596_v33, %v595_v32 }
 0x49f   : > { %v605_v36 = vmul.f32 %v604_v34, %v597_v35 }
 0x4a1   : > { %805 = vmatmul.msk.f32.vlgmr.msrb.gmra.mxu3 %vm430_vm1, %v605_v36 }
 0x524   : > { %v656_v38 = vpop.f32.mrf.mxu3 }
 0x525   : > { %v657_v40 = vadd.f32 %v656_v38, %v633_v37 }
 0x527   : > { %v660_v41 = vadd.f32 %v659_v39, %v657_v40 }
 0x529   : > { %662 = vst.msk [vmem:[%s383_s17] sm:$0x1] %vm661_vm4, %v660_v41 }
 0x52a   : > { %1015 = shalt.err (!%p1012_p12)
}
 0x52b   : > { %820 = dma.vmem_to_hbm [thread:$0]  (%p1182_p3), %s675_s25, 16, %s677_s3, %s664_s4  }
 0x52c PF: > { %s688_s19 = sand.u32 1, %s1046_s27   ;;  %p1338_p13 = scmp.ge.s32.totalorder %s1058_s30, 2 }
 0x52d   : > { %s689_s11 = scalar_lea.sflag [#allocation4], %s688_s19 }
 0x52e   : > { %p834_p0 = pnand %p1338_p13, %p1145_p6 }
 0x530   : > { %p835_p5 = pneg %p834_p0 }
 0x532   : > { %1041 = dma.done.wait (%p835_p5), %s689_s11, 16  }
 0x533   : > { %1043 = vsyncadd (%p835_p5), %s689_s11, 4294967280  ;;  %p22_p7 = scmp.ge.s32.totalorder %s1172_s26, 4   ;;  %s1339_s27 = smov %s1050_s28 }
 0x534   : > { %s1340_s28 = smov %s1054_s29  ;;  %s1341_s29 = smov %s1188_s15 }
 0x535   : > { %s1342_s30 = smov %s1172_s26  ;;  %24 = sbr.rel (!%p22_p7) target bundleno = 9 (0x9), region = 111 }
 0x53a   :  { %694 = vsyncpa [#allocation3], 1 }
 0x53b   :  { %696 = vsyncpa [#allocation3 + $0x1], 1 }
 0x53c   :  { %697 = vsyncpa [#allocation6], 1 }
 0x53d   :  { %698 = vsyncpa [#allocation4], 1 }
 0x53e   :  { %700 = vsyncpa [#allocation4 + $0x1], 1 }

</bundles_post_ra>
